<compile_context>
chip_gen: v6e
topology: v6e:2x2x1
jax: 0.10.0
libtpu: 0.0.40
codegen_flags: <defaults>
</compile_context>

<pallas_src>
import functools
import math

import jax
import jax.numpy as jnp
from jax import lax
from jax.experimental import pallas as pl
from jax.experimental.pallas import tpu as pltpu


def _round_up(n, m):
    return ((n + m - 1) // m) * m


def _pick_tile(op, ip):
    """Largest 128-multiple tile (<=512) dividing both padded O and padded I."""
    g = math.gcd(op, ip)
    for t in (512, 384, 256, 128):
        if g % t == 0:
            return t
    return 128


def _residual_kernel(x_mm_ref, w_ref, gb_ref, x_pass_ref, out_ref, *,
                     n_o_tiles, batch, eps):
    j = pl.program_id(0)

    @pl.when(j < n_o_tiles)
    def _bn_tile():
        # Linear on the MXU (bf16 operands, f32 accumulation). The Linear bias is
        # intentionally omitted: it cancels exactly under training-mode BatchNorm.
        y = jnp.dot(x_mm_ref[...], w_ref[...],
                    preferred_element_type=jnp.float32)              # [Bp, tile]

        # BatchNorm1d training-mode batch statistics (biased variance).
        # Padded batch rows of x are zero and no bias is added, so padded rows of y
        # are exactly zero: plain sums over Bp rows divided by the true batch size
        # give the correct statistics (no row mask needed).
        inv_b = 1.0 / batch
        mean = jnp.sum(y, axis=0, keepdims=True) * inv_b             # [1, tile]
        var = jnp.sum(y * y, axis=0, keepdims=True) * inv_b - mean * mean

        gamma = gb_ref[0:1, :]                                       # [1, tile]
        beta = gb_ref[1:2, :]                                        # [1, tile]
        scale = gamma * lax.rsqrt(var + eps)                         # EUP rsqrt
        out = jnp.maximum((y - mean) * scale + beta, 0.0)            # BN + ReLU
        out_ref[...] = out.astype(out_ref.dtype)                     # lane-dense store

    @pl.when(j >= n_o_tiles)
    def _passthrough_tile():
        # Fused concat: copy the corresponding x columns (f32, exact) into the tail
        # of the output slab.
        out_ref[...] = x_pass_ref[...].astype(out_ref.dtype)


def residual_forward(x, w_t, b, gamma, beta, *, eps=1e-5, mxu_dtype=jnp.bfloat16):
    """x: [B, I], w_t: [I, O], b/gamma/beta: [1, O] -> [B, O + I].

    `b` is accepted for API parity with torch.nn.Linear but is a mathematical no-op
    under training-mode BatchNorm (cancelled by the mean subtraction).
    """
    del b
    B, I = x.shape
    I_w, O = w_t.shape
    assert I_w == I, (I_w, I)

    Bp = _round_up(B, 16)        # 16 for bf16 sublane packing of the MXU operand
    Ip = _round_up(I, 128)
    Op = _round_up(O, 128)
    tile = _pick_tile(Op, Ip)
    n_o, n_i = Op // tile, Ip // tile
    grid = (n_o + n_i,)          # always >= 2 steps -> both TCs usable on v7x

    # Zero padding keeps the matmul exact and (with the dropped bias) keeps padded
    # rows of y exactly zero -- the in-kernel BN statistics rely on this invariant.
    x_p = jnp.pad(x, ((0, Bp - B), (0, Ip - I)))
    x_mm = x_p.astype(mxu_dtype)                                   # matmul LHS (bf16)
    w_p = jnp.pad(w_t, ((0, Ip - I), (0, Op - O))).astype(mxu_dtype)
    gb = jnp.pad(
        jnp.concatenate(
            [gamma.reshape(1, O).astype(jnp.float32),
             beta.reshape(1, O).astype(jnp.float32)], axis=0),
        ((0, 0), (0, Op - O)))                                     # [2, Op]

    kernel = functools.partial(
        _residual_kernel, n_o_tiles=n_o, batch=B, eps=float(eps))

    itm = jnp.dtype(mxu_dtype).itemsize
    # Double-buffered blocks + f32 temporaries (rough, generous budget).
    vmem_needed = 2 * (Bp * Ip * itm          # resident x (bf16)
                       + Ip * tile * itm      # weight tile
                       + 8 * tile * 4         # packed gamma/beta ((8,128)-padded)
                       + Bp * tile * 4        # x passthrough tile
                       + Bp * tile * 4)       # output tile
    vmem_needed += 6 * Bp * tile * 4          # y / centered / out temporaries
    vmem_limit = int(max(vmem_needed, 32 * 1024 * 1024))

    clamp_o = lambda j: jnp.minimum(j, n_o - 1)      # hold last weight block on passthrough
    clamp_i = lambda j: jnp.maximum(j - n_o, 0)      # hold first x tile during BN steps

    slab = pl.pallas_call(
        kernel,
        out_shape=jax.ShapeDtypeStruct((Bp, Op + Ip), x.dtype),
        grid=grid,
        in_specs=[
            pl.BlockSpec((Bp, Ip), lambda j: (0, 0)),               # x (bf16), resident
            pl.BlockSpec((Ip, tile), lambda j: (0, clamp_o(j))),    # weight tile streams
            pl.BlockSpec((2, tile), lambda j: (0, clamp_o(j))),     # packed gamma/beta
            pl.BlockSpec((Bp, tile), lambda j: (0, clamp_i(j))),    # x (f32) passthrough tile
        ],
        out_specs=pl.BlockSpec((Bp, tile), lambda j: (0, j)),
        compiler_params=pltpu.CompilerParams(
            dimension_semantics=("parallel",),
            vmem_limit_bytes=vmem_limit,
        ),
        cost_estimate=pl.CostEstimate(
            flops=2 * B * I * O,
            transcendentals=O,
            bytes_accessed=(itm * B * I          # x bf16
                            + itm * I * O        # weights bf16
                            + 4 * 2 * O          # gamma/beta
                            + 4 * B * I          # x f32 passthrough
                            + 4 * B * (O + I)),  # output
        ),
    )(x_mm, w_p, gb, x_p)

    # Fast path: exact final tensor straight out of the kernel (typical CTGAN sizes).
    if B == Bp and O == Op and I == Ip:
        return slab
    if O == Op:
        return slab[:B, :O + I]
    return jnp.concatenate([slab[:B, :O], x], axis=1)


def residual_reference(x, w_t, b, gamma, beta, *, eps=1e-5, mxu_dtype=None):
    """Pure-JAX reference. mxu_dtype mimics the kernel's bf16 MXU feeding if set."""
    if mxu_dtype is not None:
        y = jnp.dot(x.astype(mxu_dtype), w_t.astype(mxu_dtype),
                    preferred_element_type=jnp.float32)
    else:
        y = x @ w_t
    y = y + b
    mean = jnp.mean(y, axis=0, keepdims=True)
    var = jnp.mean((y - mean) ** 2, axis=0, keepdims=True)
    out = gamma * (y - mean) / jnp.sqrt(var + eps) + beta
    out = jnp.maximum(out, 0.0)
    return jnp.concatenate([out, x], axis=1)


if __name__ == "__main__":
    key = jax.random.PRNGKey(0)

    # One unaligned case (exercises padding + wrapper concat path) and one fully
    # aligned case (exercises the zero-copy fused-concat fast path).
    for (B, I, O) in [(8, 32, 64), (16, 128, 128)]:
        key, kx, kw, kb, kg, kbe = jax.random.split(key, 6)
        x = jax.random.normal(kx, (B, I), dtype=jnp.float32)

        bound = 1.0 / float(I) ** 0.5
        w = jax.random.uniform(kw, (O, I), minval=-bound, maxval=bound, dtype=jnp.float32)
        b = jax.random.uniform(kb, (1, O), minval=-bound, maxval=bound, dtype=jnp.float32)
        gamma = 1.0 + 0.1 * jax.random.normal(kg, (1, O), dtype=jnp.float32)
        beta = 0.1 * jax.random.normal(kbe, (1, O), dtype=jnp.float32)

        w_t = w.T  # [I, O] so the kernel does x @ w_t (matches torch Linear y = x W^T + b)

        out = jax.block_until_ready(residual_forward(x, w_t, b, gamma, beta))
        assert out.shape == (B, O + I), out.shape

        # Strict check vs a reference using identical bf16 MXU-input rounding.
        ref_bf16 = residual_reference(x, w_t, b, gamma, beta, mxu_dtype=jnp.bfloat16)
        assert jnp.allclose(out, ref_bf16, atol=1e-4, rtol=1e-4), \
            f"mismatch vs bf16-matched reference at (B,I,O)=({B},{I},{O})"

        # Loose sanity check vs the pure-f32 PyTorch-equivalent math (bf16 MXU inputs
        # only perturb the Linear; BN renormalizes, so errors stay at the ~1e-3 level).
        ref_f32 = residual_reference(x, w_t, b, gamma, beta)
        assert jnp.allclose(out, ref_f32, atol=5e-2, rtol=5e-2), \
            f"mismatch vs f32 reference at (B,I,O)=({B},{I},{O})"

    print("KERNEL_OK")
</pallas_src>

<mosaic_0001>
module attributes {stable_mosaic.version = 11 : i64} {
  func.func @_residual_kernel(%arg0: i32, %arg1: memref<16x128xbf16, #tpu.memory_space<vmem>>, %arg2: memref<128x128xbf16, #tpu.memory_space<vmem>>, %arg3: memref<2x128xf32, #tpu.memory_space<vmem>>, %arg4: memref<16x128xf32, #tpu.memory_space<vmem>>, %arg5: memref<16x128xf32, #tpu.memory_space<vmem>>) attributes {dimension_semantics = [#tpu.dimension_semantics<parallel>], iteration_bounds = array<i64: 2>, scalar_prefetch = 0 : i64, scratch_operands = 0 : i64, tpu.core_type = #tpu.core_type<tc>, window_params = [{pipeline_mode = #tpu.pipeline_mode<synchronous>, transform_indices = @transform_0, window_bounds = array<i64: 16, 128>}, {transform_indices = @transform_1, window_bounds = array<i64: 128, 128>}, {transform_indices = @transform_2, window_bounds = array<i64: 2, 128>}, {transform_indices = @transform_3, window_bounds = array<i64: 16, 128>}, {transform_indices = @transform_4, window_bounds = array<i64: 16, 128>}]} {
    %c1_i32 = arith.constant 1 : i32
    %0 = arith.cmpi slt, %arg0, %c1_i32 : i32
    %1 = arith.extui %0 : i1 to i32
    %c0_i32 = arith.constant 0 : i32
    %2 = arith.cmpi ne, %1, %c0_i32 : i32
    scf.if %2 {
      %c0 = arith.constant 0 : index
      %c0_2 = arith.constant 0 : index
      %6 = vector.load %arg1[%c0, %c0_2] : memref<16x128xbf16, #tpu.memory_space<vmem>>, vector<16x128xbf16>
      %c0_3 = arith.constant 0 : index
      %c0_4 = arith.constant 0 : index
      %7 = vector.load %arg2[%c0_3, %c0_4] : memref<128x128xbf16, #tpu.memory_space<vmem>>, vector<128x128xbf16>
      %cst = arith.constant dense<0.000000e+00> : vector<16x128xf32>
      %8 = tpu.matmul %6, %7, %cst {dimension_numbers = #tpu.dot_dimension_numbers<[1], [0], [0], [1], [0, 0, 1, 1], [], []>} : vector<16x128xbf16>, vector<128x128xbf16>, vector<16x128xf32> -> vector<16x128xf32>
      %cst_5 = arith.constant dense<0.000000e+00> : vector<128xf32>
      %9 = vector.multi_reduction <add>, %8, %cst_5 [0] : vector<16x128xf32> to vector<128xf32>
      %10 = vector.shape_cast %9 : vector<128xf32> to vector<1x128xf32>
      %cst_6 = arith.constant 1.250000e-01 : f32
      %11 = vector.broadcast %cst_6 : f32 to vector<1x128xf32>
      %12 = arith.mulf %10, %11 : vector<1x128xf32>
      %13 = arith.mulf %8, %8 : vector<16x128xf32>
      %cst_7 = arith.constant dense<0.000000e+00> : vector<128xf32>
      %14 = vector.multi_reduction <add>, %13, %cst_7 [0] : vector<16x128xf32> to vector<128xf32>
      %15 = vector.shape_cast %14 : vector<128xf32> to vector<1x128xf32>
      %cst_8 = arith.constant 1.250000e-01 : f32
      %16 = vector.broadcast %cst_8 : f32 to vector<1x128xf32>
      %17 = arith.mulf %15, %16 : vector<1x128xf32>
      %18 = arith.mulf %12, %12 : vector<1x128xf32>
      %19 = arith.subf %17, %18 : vector<1x128xf32>
      %c0_9 = arith.constant 0 : index
      %c0_10 = arith.constant 0 : index
      %20 = vector.load %arg3[%c0_9, %c0_10] : memref<2x128xf32, #tpu.memory_space<vmem>>, vector<1x128xf32>
      %c1 = arith.constant 1 : index
      %c0_11 = arith.constant 0 : index
      %21 = vector.load %arg3[%c1, %c0_11] : memref<2x128xf32, #tpu.memory_space<vmem>>, vector<1x128xf32>
      %cst_12 = arith.constant 9.99999974E-6 : f32
      %22 = vector.broadcast %cst_12 : f32 to vector<1x128xf32>
      %23 = arith.addf %19, %22 : vector<1x128xf32>
      %24 = math.rsqrt %23 : vector<1x128xf32>
      %25 = arith.mulf %20, %24 : vector<1x128xf32>
      %26 = vector.broadcast %12 : vector<1x128xf32> to vector<16x128xf32>
      %27 = arith.subf %8, %26 : vector<16x128xf32>
      %28 = vector.broadcast %25 : vector<1x128xf32> to vector<16x128xf32>
      %29 = arith.mulf %27, %28 : vector<16x128xf32>
      %30 = vector.broadcast %21 : vector<1x128xf32> to vector<16x128xf32>
      %31 = arith.addf %29, %30 : vector<16x128xf32>
      %cst_13 = arith.constant 0.000000e+00 : f32
      %32 = vector.broadcast %cst_13 : f32 to vector<16x128xf32>
      %33 = arith.maximumf %31, %32 : vector<16x128xf32>
      %c0_14 = arith.constant 0 : index
      %c0_15 = arith.constant 0 : index
      %34 = vector.load %arg5[%c0_14, %c0_15] : memref<16x128xf32, #tpu.memory_space<vmem>>, vector<16x128xf32>
      tpu.vector_store %arg5[%c0_14, %c0_15], %33 {strides = array<i32>} : memref<16x128xf32, #tpu.memory_space<vmem>>, vector<16x128xf32>,
    } else {
    }
    %c1_i32_0 = arith.constant 1 : i32
    %3 = arith.cmpi sge, %arg0, %c1_i32_0 : i32
    %4 = arith.extui %3 : i1 to i32
    %c0_i32_1 = arith.constant 0 : i32
    %5 = arith.cmpi ne, %4, %c0_i32_1 : i32
    scf.if %5 {
      %c0 = arith.constant 0 : index
      %c0_2 = arith.constant 0 : index
      %6 = vector.load %arg4[%c0, %c0_2] : memref<16x128xf32, #tpu.memory_space<vmem>>, vector<16x128xf32>
      %c0_3 = arith.constant 0 : index
      %c0_4 = arith.constant 0 : index
      %7 = vector.load %arg5[%c0_3, %c0_4] : memref<16x128xf32, #tpu.memory_space<vmem>>, vector<16x128xf32>
      tpu.vector_store %arg5[%c0_3, %c0_4], %6 {strides = array<i32>} : memref<16x128xf32, #tpu.memory_space<vmem>>, vector<16x128xf32>,
    } else {
    }
    return
  }
  func.func @transform_0(%arg0: i32) -> (i32, i32) {
    %c0_i32 = arith.constant 0 : i32
    %c0_i32_0 = arith.constant 0 : i32
    %c0_i32_1 = arith.constant 0 : i32
    return %c0_i32, %c0_i32_0 : i32, i32
  }
  func.func @transform_1(%arg0: i32) -> (i32, i32) {
    %c0_i32 = arith.constant 0 : i32
    %0 = arith.minsi %arg0, %c0_i32 : i32
    %c0_i32_0 = arith.constant 0 : i32
    %c0_i32_1 = arith.constant 0 : i32
    return %c0_i32_0, %0 : i32, i32
  }
  func.func @transform_2(%arg0: i32) -> (i32, i32) {
    %c0_i32 = arith.constant 0 : i32
    %0 = arith.minsi %arg0, %c0_i32 : i32
    %c0_i32_0 = arith.constant 0 : i32
    %c0_i32_1 = arith.constant 0 : i32
    return %c0_i32_0, %0 : i32, i32
  }
  func.func @transform_3(%arg0: i32) -> (i32, i32) {
    %c1_i32 = arith.constant 1 : i32
    %0 = arith.subi %arg0, %c1_i32 : i32
    %c0_i32 = arith.constant 0 : i32
    %1 = arith.maxsi %0, %c0_i32 : i32
    %c0_i32_0 = arith.constant 0 : i32
    %c0_i32_1 = arith.constant 0 : i32
    return %c0_i32_0, %1 : i32, i32
  }
  func.func @transform_4(%arg0: i32) -> (i32, i32) {
    %c0_i32 = arith.constant 0 : i32
    %c0_i32_0 = arith.constant 0 : i32
    return %c0_i32, %arg0 : i32, i32
  }
}

</mosaic_0001>

<bundles_post_ra>
// kernel: tpu_custom_call.1
= control target key start
LH: loop header
LB: loop body
LE: loop exit
PB: predicated region body
PF: predicated region fallthrough
CT: control target
= control target key end

     0   :  { %s1404_s0 = inlined_call_operand.hbm [shape: bf16[16,128], index: 0, kind: input, shape index: {}]   ;;  %s1405_s1 = inlined_call_operand.hbm [shape: bf16[128,128], index: 1, kind: input, shape index: {}]   ;;  %s1406_s2 = inlined_call_operand.vmem [shape: f32[2,128], index: 2, kind: input, shape index: {}]   ;;  %s1407_s3 = inlined_call_operand.hbm [shape: f32[16,128], index: 3, kind: input, shape index: {}]   ;;  %s1408_s4 = inlined_call_operand.hbm [shape: f32[16,256], index: 4, kind: output, shape index: {}]  }
   0x1   :  { %1422 = sst [smem:[#allocation19_spill]] %s1405_s1 }
   0x2   :  { %9 = vsyncpa [#allocation3], 0 }
   0x3   :  { %10 = vsyncpa [#allocation6], 0 }
   0x4   :  { %12 = vsyncpa [#allocation6 + $0x1], 0 }
   0x5   :  { %13 = vsyncpa [#allocation4], 0 }
   0x6   :  { %15 = vsyncpa [#allocation4 + $0x1], 0  ;;  %s1053_s15 = smov 0   ;;  %s1055_s16 = smov 0  }
   0x7   :  { %s1057_s17 = smov 0   ;;  %s1059_s18 = smov 0  }
   0x8   :  { %s1061_s19 = smov 0   ;;  %s1063_s20 = smov 0  }
   0x9   :  { %s1065_s21 = smov 0   ;;  %s1067_s22 = smov 0  }
   0xa   :  { %s1069_s23 = smov 0   ;;  %s1071_s24 = smov 0  }
   0xb LB: > { %1423 = sst [smem:[#allocation13_spill]] %s985_s17  ;;  %s1104_s25 = sadd.s32 1, %s1013_s24   ;;  %s1013_s24 = sphi %s1071_s24, %s1452_s24   ;;  %s1009_s23 = sphi %s1069_s23, %s1456_s23   ;;  %s1005_s22 = sphi %s1067_s22, %s1463_s22   ;;  %s1001_s21 = sphi %s1065_s21, %s1462_s21   ;;  %s997_s20 = sphi %s1063_s20, %s1461_s20   ;;  %s993_s19 = sphi %s1061_s19, %s1460_s19   ;;  %s989_s18 = sphi %s1059_s18, %s1459_s18   ;;  %s985_s17 = sphi %s1057_s17, %s1454_s17   ;;  %s981_s16 = sphi %s1055_s16, %s1458_s16   ;;  %s977_s15 = sphi %s1053_s15, %s1457_s15  }
   0xc   : > { %1424 = sst [smem:[#allocation14_spill]] %s1009_s23  ;;  %p46_p0 = scmp.lt.s32.totalorder %s1013_s24, 0 }
   0xd   : > { %1425 = sst [smem:[#allocation15_spill]] %s1104_s25  ;;  %p48_p1 = scmp.lt.s32.totalorder %s1104_s25, 0 }
   0xe   : > { %s53_s26 = sadd.s32 1, %s1009_s23  ;;  %p60_p2 = scmp.ne.s32.totalorder %s1009_s23, %s1005_s22 }
   0xf   : > { %s47_s27 = scalar_select %p46_p0, %s1013_s24, 0 }
  0x10   : > { %s49_s28 = scalar_select %p48_p1, %s1104_s25, 0 }
  0x11   : > { %p1410_p3 = scmp.eq.s32.totalorder %s1013_s24, 0  ;;  %s138_s30 = ssub.s32 %s1013_s24, %s1104_s25 }
  0x12   : > { %s50_s29 = ssub.s32 %s47_s27, %s49_s28  ;;  %p139_p6 = scmp.eq.s32.totalorder %s138_s30, 0 }
  0x13   : > { %p51_p4 = scmp.eq.s32.totalorder %s50_s29, 0  ;;  %p1118_p5 = por %p1410_p3, %p60_p2 }
  0x14   : > { %s141_s6 = sadd.s32 1, %s985_s17  ;;  %p1409_p8 = scmp.lt.s32.totalorder %s1013_s24, 2 }
  0x15   : > { %s1124_s7 = scalar_select %p51_p4, %s1009_s23, %s53_s26  }
  0x16   : > { %s1127_s8 = scalar_select %p139_p6, %s985_s17, %s141_s6  }
  0x17   : > { %1427 = sst [smem:[#allocation16_spill]] %s1124_s7  ;;  %s191_s9 = sand.u32 1, %s1013_s24  }
  0x18   : > { %1428 = sst [smem:[#allocation17_spill]] %s1127_s8  ;;  %s193_s10 = sand.u32 1, %s1009_s23  }
  0x19   : > { %s622_s11 = sshll.u32 %s193_s10, 6  ;;  %s623_s12 = sshll.u32 %s47_s27, 6 }
  0x1a   : > { %s1429_s1 = sld [smem:[#allocation19_spill]]  ;;  %s195_s29 = scalar_lea.vmem [#allocation5], %s622_s11 }
  0x1b   : > { %s203_s30 = sshll.u32 %s195_s29, 4  ;;  %p1144_p9 = pnand %p1409_p8, %p1118_p5  ;;  %s1138_s30 = int_to_ptr.vmem [resolvable:$true] %s203_s30 }
  0x1c   : > { %s1148_s27 = scalar_lea.sflag [#allocation6], %s191_s9 }
  0x1d   : > { %p813_p11 = pneg %p1144_p9 }
  0x20   : > { %s1136_s28 = scalar_lea.hbm %s1429_s1, %s623_s12  ;;  %s816_s12 = scalar_lea.hbm %s1429_s1, 1024 }
  0x21   : > { %s811_s6 = scalar_lea.hbm %s1136_s28, 1024  ;;  %p817_p0 = scmp.lt.s32.totalorder %s1136_s28, %s1429_s1 }
  0x22   : > { %p812_p10 = scmp.ne.s32.totalorder %s1136_s28, %s811_s6  ;;  %p818_p1 = scmp.lt.s32.totalorder %s816_s12, %s811_s6 }
  0x24   : > { %p814_p12 = pnand %p813_p11, %p812_p10  ;;  %p819_p2 = por %p818_p1, %p817_p0 }
  0x26   : > { %p815_p13 = pneg %p814_p12 }
  0x28   : > { %p820_p4 = pnand %p819_p2, %p815_p13 }
  0x2a   : > { %823 = shalt.err (!%p820_p4)
}
  0x2b   : > { %s824_s9 = scalar_lea.vmem %s1138_s30, 1024  ;;  %s1015_s14 = smov [#allocation5]  }
  0x2c   : > { %p825_p5 = scmp.ne.s32.totalorder %s1138_s30, %s824_s9  ;;  %s829_s29 = sshll.u32 %s1015_s14, 4  ;;  %s830_s29 = int_to_ptr.vmem [resolvable:$false] %s829_s29 }
  0x2d   : > { %s831_s10 = scalar_lea.vmem %s830_s29, 2048  ;;  %p832_p12 = scmp.lt.s32.totalorder %s1138_s30, %s830_s29 }
  0x2e   : > { %p827_p6 = pnand %p825_p5, %p813_p11  ;;  %p833_p7 = scmp.lt.s32.totalorder %s831_s10, %s824_s9 }
  0x30   : > { %p828_p10 = pneg %p827_p6  ;;  %p834_p8 = por %p833_p7, %p832_p12 }
  0x32   : > { %p835_p3 = pnand %p834_p8, %p828_p10 }
  0x34   : > { %838 = shalt.err (!%p835_p3)
}
  0x35   : > { %s1411_s6 = smov 64   ;;  %s1017_s11 = smov 4  }
  0x36   : > { %698 = dma.hbm_to_vmem [thread:$0]  (!%p1144_p9), %s1136_s28, 1024, %s1138_s30, %s1148_s27, %s1411_s6, %s1411_s6, %s1017_s11  }
  0x37   : > { %s1173_s12 = sadd.s32 4294967295, %s1013_s24   ;;  %s616_s13 = sadd.s32 4294967294, %s1013_s24  }
  0x38   : > { %p66_p3 = scmp.ne.s32.totalorder %s1005_s22, %s1001_s21  ;;  %p1419_p7 = scmp.eq.s32.totalorder %s1173_s12, 0 }
  0x39   : > { %p128_p8 = scmp.ne.s32.totalorder %s993_s19, %s989_s18  ;;  %p151_p11 = scmp.ne.s32.totalorder %s985_s17, %s981_s16 }
  0x3a   : > { %p152_p13 = scmp.eq.s32.totalorder %s1173_s12, 1  ;;  %p1186_p0 = por %p1419_p7, %p66_p3 }
  0x3b   : > { %p1192_p9 = por %p128_p8, %p1419_p7  ;;  %p157_p2 = scmp.ne.s32.totalorder %s981_s16, %s977_s15 }
  0x3c   : > { %s1431_s26 = scalar_select %p1186_p0, 1, 0 }
  0x3d   : > { %s1432_s28 = scalar_select %p1192_p9, 1, 0 }
  0x3e   : > { %p1196_p1 = por %p152_p13, %p151_p11  ;;  %p158_p4 = scmp.eq.s32.totalorder %s616_s13, 1 }
  0x3f   : > { %p619_p5 = scmp.ge.s32.totalorder %s1013_s24, 1  ;;  %p165_p6 = scmp.lt.s32.totalorder %s1013_s24, 3 }
  0x40   : > { %s1433_s21 = scalar_select %p1196_p1, 1, 0 }
  0x41   : > { %p1204_p10 = por %p158_p4, %p157_p2  ;;  %p1208_p12 = pnand %p619_p5, %p165_p6 }
  0x42   : > { %s1018_s5 = smov [#allocation2]   ;;  %p107_p8 = scmp.gt.s32.totalorder %s1173_s12, 0 }
  0x43   : > { %s1434_s18 = scalar_select %p1204_p10, 1, 0 }
  0x44   : > { %s1436_s30 = scalar_select %p1208_p12, 1, 0 }
  0x45   : > { %1435 = sst [smem:[#allocation18_spill]] %s1434_s18  ;;  %s177_s9 = sshll.u32 %s1018_s5, 4  ;;  %s178_s9 = int_to_ptr.vmem [resolvable:$true] %s177_s9 }
  0x46   : > { %p691_p3 = pneg %p1208_p12  ;;  %s618_s14 = sadd.s32 4294967295, %s1104_s25 }
  0x47   : > { %p1222_p13 = scmp.gt.s32.totalorder %s618_s14, 0  ;;  %s115_s6 = sadd.s32 1, %s997_s20 }
  0x48   : > { %p1218_p11 = pnand %p691_p3, %p1419_p7  ;;  %s850_s5 = scalar_lea.vmem %s178_s9, 128 }
  0x49   : > { %s108_s13 = scalar_select %p107_p8, %s1173_s12, 0 }
  0x4a   : > { %p841_p2 = pneg %p1218_p11  ;;  %p851_p4 = scmp.ne.s32.totalorder %s178_s9, %s850_s5 }
  0x4b   : > { %p858_p10 = scmp.lt.s32.totalorder %s178_s9, %s178_s9  ;;  %p859_p1 = scmp.lt.s32.totalorder %s850_s5, %s850_s5 }
  0x4c   : > { %p853_p5 = pnand %p851_p4, %p841_p2 }
  0x4d   : > { %p860_p9 = por %p859_p1, %p858_p10 }
  0x4e   : > { %p854_p6 = pneg %p853_p5 }
  0x50   : > { %p861_p3 = pnand %p860_p9, %p854_p6 }
  0x52   : > { %864 = shalt.err (!%p861_p3)
}
  0x53   : > { %s1439_s1 = smov 64   ;;  %s1465_s14 = smov (!%p1222_p13, %s618_s14), 0 }
  0x54   : > { %694 = dma.hbm_to_vmem [thread:$0]  (!%p1218_p11), %s1404_s0, 128, %s178_s9, [#allocation3], %s1439_s1, %s1439_s1, %s1017_s11  }
  0x55   : > { %p122_p9 = scmp.ne.s32.totalorder %s997_s20, %s993_s19  ;;  %s226_s5 = sand.u32 1, %s997_s20  }
  0x56   : > { %s112_s8 = ssub.s32 %s108_s13, %s1465_s14  ;;  %s624_s29 = sshll.u32 %s226_s5, 4 }
  0x57   : > { %p113_p1 = scmp.eq.s32.totalorder %s112_s8, 0  ;;  %p1440_p10 = scmp.eq.s32.totalorder %s1013_s24, 0 }
  0x58   : > { %s626_s17 = sshll.u32 %s108_s13, 7  ;;  %s228_s1 = scalar_lea.vmem [#allocation7], %s624_s29 }
  0x59   : > { %p124_p8 = por %p122_p9, %p1440_p10  ;;  %s1251_s18 = scalar_lea.hbm %s1407_s3, %s626_s17 }
  0x5a   : > { %s1246_s25 = scalar_select %p113_p1, %s997_s20, %s115_s6  }
  0x5b   : > { %s237_s11 = sshll.u32 %s228_s1, 4  ;;  %p1441_p11 = scmp.lt.s32.totalorder %s1013_s24, 2  ;;  %s1253_s11 = int_to_ptr.vmem [resolvable:$true] %s237_s11 }
  0x5c   : > { %s865_s6 = scalar_lea.hbm %s1251_s18, 256  ;;  %s870_s14 = scalar_lea.hbm %s1407_s3, 256 }
  0x5d   : > { %p1257_p13 = pnand %p1441_p11, %p124_p8  ;;  %p866_p2 = scmp.ne.s32.totalorder %s1251_s18, %s865_s6 }
  0x5e   : > { %p871_p3 = scmp.lt.s32.totalorder %s1251_s18, %s1407_s3  ;;  %p872_p9 = scmp.lt.s32.totalorder %s870_s14, %s865_s6 }
  0x5f   : > { %p867_p4 = pneg %p1257_p13 }
  0x60   : > { %p873_p1 = por %p872_p9, %p871_p3 }
  0x61   : > { %p868_p5 = pnand %p867_p4, %p866_p2 }
  0x63   : > { %p869_p6 = pneg %p868_p5 }
  0x65   : > { %p874_p10 = pnand %p873_p1, %p869_p6 }
  0x67   : > { %877 = shalt.err (!%p874_p10)
}
  0x68   : > { %s878_s5 = scalar_lea.vmem %s1253_s11, 256  ;;  %s1019_s29 = smov [#allocation7]  }
  0x69   : > { %p879_p8 = scmp.ne.s32.totalorder %s1253_s11, %s878_s5  ;;  %s883_s23 = sshll.u32 %s1019_s29, 4  ;;  %s884_s23 = int_to_ptr.vmem [resolvable:$false] %s883_s23 }
  0x6a   : > { %s885_s7 = scalar_lea.vmem %s884_s23, 512  ;;  %p886_p5 = scmp.lt.s32.totalorder %s1253_s11, %s884_s23 }
  0x6b   : > { %p881_p11 = pnand %p879_p8, %p867_p4  ;;  %p887_p7 = scmp.lt.s32.totalorder %s885_s7, %s878_s5 }
  0x6d   : > { %p882_p2 = pneg %p881_p11  ;;  %p888_p0 = por %p887_p7, %p886_p5 }
  0x6f   : > { %p889_p12 = pnand %p888_p0, %p882_p2 }
  0x71   : > { %892 = shalt.err (!%p889_p12)
}
  0x72   : > { %s1020_s1 = smov 128   ;;  %s1021_s6 = smov 8  }
  0x73   : > { %701 = dma.hbm_to_vmem [thread:$0]  (!%p1257_p13), %s1251_s18, 256, %s1253_s11, %s1148_s27, %s1020_s1, %s1020_s1, %s1021_s6  }
  0x74   : > { %p1443_p4 = scmp.ne.s32.totalorder %s1436_s30, 0 }
  0x75   : > { %p1444_p6 = scmp.eq.s32.totalorder (!%p1443_p4), %s1173_s12, 0 }
  0x76   : > { %249 = sbr.rel (%p1443_p4) target bundleno = 453 (0x1c5), region = 36 }
  0x7b   : > { %960 = dma.done.wait (%p1444_p6), [#allocation3], 128   ;;  %p1445_p3 = pmov %p1444_p6 }
  0x7c   : > { %s255_s17 = sand.u32 1, %s1173_s12   ;;  %s257_s9 = sand.u32 1, %s1005_s22  }
  0x7d   : > { %962 = vsyncadd (%p1445_p3), [#allocation3], 4294967168  ;;  %s629_s14 = sshll.u32 %s257_s9, 6  ;;  %s256_s10 = scalar_lea.sflag [#allocation6], %s255_s17 }
  0x7e   : > { %s1288_s13 = scalar_lea.vmem [#allocation5], %s629_s14  ;;  %p1446_p7 = scmp.ne.s32.totalorder %s1431_s26, 0 }
  0x80   : > { %964 = dma.done.wait (%p1446_p7), %s256_s10, 1024  }
  0x81   : > { %966 = vsyncadd (%p1446_p7), %s256_s10, 4294966272  ;;  %s266_s27 = sand.u32 1, %s993_s19   ;;  %p1447_p0 = scmp.ne.s32.totalorder %s1432_s28, 0 }
  0x82   : > { %s1295_s18 = sshll.u32 %s266_s27, 4 }
  0x83   : > { %s268_s30 = scalar_lea.vmem [#allocation7], %s1295_s18 }
  0x84   : > { %968 = dma.done.wait (%p1447_p0), %s256_s10, 256  }
  0x85   : > { %970 = vsyncadd (%p1447_p0), %s256_s10, 4294967040  ;;  %s301_s11 = sand.u32 1, %s981_s16   ;;  %p306_p12 = scmp.lt.s32.totalorder %s1173_s12, 0 }
  0x86   : > { %s631_s26 = sshll.u32 %s301_s11, 4  ;;  %p636_p13 = scmp.ge.s32.totalorder %s1173_s12, 1 }
  0x87   : > { %s307_s8 = scalar_select %p306_p12, %s1173_s12, 0 }
  0x88   : > { %s1312_s1 = scalar_lea.vmem [#allocation8], %s631_s26  ;;  %321 = sbr.rel (%p636_p13) target bundleno = 418 (0x1a2), region = 52 }
  0x89   : > { %s1467_s8 = smov (!%p306_p12, %s307_s8), 0 }
  0x8a   : > { %s635_s5 = sshll.u32 %s1467_s8, 1 }
  0x8b   : > { %s1310_s7 = scalar_lea.vmem %s1406_s2, %s635_s5 }
  0x8d   : > { %v800_v0 = vld [vmem:[%s1288_s13 + $0x38] sm:$0xff]   ;;  %v1022_v1 = vmov 0.0   ;;  %v801_v2 = vld [vmem:[%s1288_s13 + $0x30] sm:$0xff]   ;;  %vm1023_vm0 = vmmov 0   ;;  %v802_v3 = vld [vmem:[%s1288_s13 + $0x28] sm:$0xff]   ;;  %v462_v35 = vlaneseq }
  0x8e   : > { %661 = vmatprep.subr.bf16.mxu0 %v1022_v1  ;;  %677 = vmatprep.mubr.msk.bf16.mxu0 %vm1023_vm0, %v1022_v1  ;;  %v803_v4 = vld [vmem:[%s1288_s13 + $0x20] sm:$0xff]   ;;  %v804_v5 = vld [vmem:[%s1288_s13 + $0x18] sm:$0xff]   ;;  %v805_v6 = vld [vmem:[%s1288_s13 + $0x10] sm:$0xff]  }
  0x8f   : > { %662 = vmatpush3.bf16.msra.mxu0 %v800_v0  ;;  %v806_v7 = vld [vmem:[%s1288_s13 + $0x8] sm:$0xff]   ;;  %v807_v8 = vld [vmem:[%s1288_s13] sm:$0xff]   ;;  %v808_v9 = vld [vmem:[#allocation2] sm:$0xff]   ;;  %v463_v36 = vshrl.u32 %v462_v35, 7 }
  0x90   : > { %663 = vmatprep.subr.bf16.mxu0 %v1022_v1  ;;  %v455_v37 = vld [vmem:[%s1310_s7] sm:$0x1]  ;;  %v646_v44 = vld [vmem:[%s1310_s7 + $0x1] ss:$0 sm:$0xff] }
  0x91   : > { %v464_v38 = vsub.s32 0, %v463_v36 }
  0x93   : > { %664 = vmatpush3.bf16.msra.mxu0 %v801_v2 }
  0x94   : > { %665 = vmatprep.subr.bf16.mxu0 %v1022_v1 }
  0x97   : > { %666 = vmatpush3.bf16.msra.mxu0 %v802_v3 }
  0x98   : > { %667 = vmatprep.subr.bf16.mxu0 %v1022_v1 }
  0x9b   : > { %668 = vmatpush3.bf16.msra.mxu0 %v803_v4 }
  0x9c   : > { %669 = vmatprep.subr.bf16.mxu0 %v1022_v1 }
  0x9f   : > { %670 = vmatpush3.bf16.msra.mxu0 %v804_v5 }
  0xa0   : > { %671 = vmatprep.subr.bf16.mxu0 %v1022_v1 }
  0xa3   : > { %672 = vmatpush3.bf16.msra.mxu0 %v805_v6 }
  0xa4   : > { %673 = vmatprep.subr.bf16.mxu0 %v1022_v1 }
  0xa7   : > { %674 = vmatpush3.bf16.msra.mxu0 %v806_v7 }
  0xa8   : > { %675 = vmatprep.subr.bf16.mxu0 %v1022_v1 }
  0xab   : > { %676 = vmatpush3.bf16.msra.mxu0 %v807_v8 }
  0xae   : > { %678 = vmatmul.mubr.bf16.vlgmr.msra.gmra.mxu0 %v808_v9 }
 0x16e   : > { %v428_v10 = vpop.f32.mrf.mxu0 }
 0x16f   : > { %v443_v13 = vmul.f32 %v428_v10, %v428_v10 }
 0x170   : > { %v679_v11 = vpop.f32.mrf.mxu0 }
 0x172   : > { %v431_v12 = vpop.f32.mrf.mxu0 }
 0x173   : > { %v435_v14 = vadd.f32 %v431_v12, %v428_v10  ;;  %v444_v15 = vmul.f32 %v431_v12, %v431_v12 }
 0x174   : > { %v680_v16 = vpop.f32.mrf.mxu0 }
 0x175   : > { %v436_v17 = vrot.slane %v435_v14, 4  ;;  %v445_v18 = vadd.f32 %v444_v15, %v443_v13 }
 0x177   : > { %v437_v19 = vadd.f32 %v436_v17, %v435_v14  ;;  %v446_v20 = vrot.slane %v445_v18, 4 }
 0x179   : > { %v438_v21 = vrot.slane %v437_v19, 2  ;;  %v447_v22 = vadd.f32 %v446_v20, %v445_v18 }
 0x17b   : > { %v439_v23 = vadd.f32 %v438_v21, %v437_v19  ;;  %v448_v24 = vrot.slane %v447_v22, 2 }
 0x17d   : > { %v440_v25 = vrot.slane %v439_v23, 1  ;;  %v449_v26 = vadd.f32 %v448_v24, %v447_v22 }
 0x17f   : > { %v441_v27 = vadd.f32 %v440_v25, %v439_v23  ;;  %v450_v28 = vrot.slane %v449_v26, 1 }
 0x181   : > { %v442_v29 = vmul.f32 0.125, %v441_v27  ;;  %v451_v30 = vadd.f32 %v450_v28, %v449_v26 }
 0x183   : > { %v452_v31 = vmul.f32 0.125, %v451_v30  ;;  %v453_v32 = vmul.f32 %v442_v29, %v442_v29  ;;  %v460_v41 = vsub.f32 %v428_v10, %v442_v29  ;;  %v461_v42 = vsub.f32 %v431_v12, %v442_v29 }
 0x185   : > { %v454_v33 = vsub.f32 %v452_v31, %v453_v32 }
 0x187   : > { %v457_v34 = vadd.f32 1e-05, %v454_v33 }
 0x189   : > { %809 = vrsqrt.f32 %v457_v34 }
 0x196   : > { %v810_v39 = vpop.eup %809 }
 0x197   : > { %v459_v40 = vmul.f32 %v810_v39, %v455_v37 }
 0x199   : > { %v465_v43 = vrot.slane %v459_v40, %v464_v38 }
 0x19b   : > { %v466_v45 = vmul.f32 %v465_v43, %v460_v41  ;;  %v467_v46 = vmul.f32 %v465_v43, %v461_v42 }
 0x19d   : > { %v472_v47 = vadd.f32 %v646_v44, %v466_v45  ;;  %v473_v48 = vadd.f32 %v646_v44, %v467_v46 }
 0x19f   : > { %v474_v49 = vmax.f32 %v472_v47, 0.0  ;;  %v475_v50 = vmax.f32 %v473_v48, 0.0 }
 0x1a1   : > { %476 = vst [vmem:[%s1312_s1] sm:$0xff] %v474_v49  ;;  %477 = vst [vmem:[%s1312_s1 + $0x8] sm:$0xff] %v475_v50 }
 0x1a2 PF: > { %p647_p9 = scmp.lt.s32.totalorder %s1173_s12, 1 }
 0x1a4   : > { %481 = sbr.rel (%p647_p9) target bundleno = 427 (0x1ab), region = 56 }
 0x1a9   : > { %v482_v51 = vld [vmem:[%s268_s30] sm:$0xff]  ;;  %v483_v52 = vld [vmem:[%s268_s30 + $0x8] sm:$0xff] }
 0x1aa   : > { %484 = vst [vmem:[%s1312_s1] sm:$0xff] %v482_v51  ;;  %485 = vst [vmem:[%s1312_s1 + $0x8] sm:$0xff] %v483_v52 }
 0x1ab PF: > { %s649_s28 = sshll.u32 %s1173_s12, 7  ;;  %s499_s14 = sshll.u32 %s1312_s1, 4  ;;  %s1341_s14 = int_to_ptr.vmem [resolvable:$true] %s499_s14 }
 0x1ac   : > { %s1338_s9 = scalar_lea.hbm %s1408_s4, %s649_s28  ;;  %s1345_s10 = scalar_lea.sflag [#allocation4], %s301_s11 }
 0x1ad   : > { %s893_s13 = scalar_lea.vmem %s1341_s14, 256  ;;  %p1448_p10 = scmp.ne.s32.totalorder %s1433_s21, 0 }
 0x1ae   : > { %p894_p1 = scmp.ne.s32.totalorder %s1341_s14, %s893_s13  ;;  %s1024_s12 = smov [#allocation8]  }
 0x1af   : > { %s897_s27 = sshll.u32 %s1024_s12, 4  ;;  %s898_s27 = int_to_ptr.vmem [resolvable:$false] %s897_s27 }
 0x1b0   : > { %p895_p8 = pnand %p894_p1, %p1448_p10  ;;  %s899_s18 = scalar_lea.vmem %s898_s27, 512 }
 0x1b1   : > { %p900_p2 = scmp.lt.s32.totalorder %s1341_s14, %s898_s27  ;;  %p901_p5 = scmp.lt.s32.totalorder %s899_s18, %s893_s13 }
 0x1b2   : > { %p896_p11 = pneg %p895_p8 }
 0x1b3   : > { %p902_p4 = por %p901_p5, %p900_p2 }
 0x1b5   : > { %p903_p6 = pnand %p902_p4, %p896_p11 }
 0x1b7   : > { %906 = shalt.err (!%p903_p6)
}
 0x1b8   : > { %s907_s30 = scalar_lea.hbm %s1338_s9, 256  ;;  %s911_s8 = scalar_lea.hbm %s1408_s4, 512 }
 0x1b9   : > { %p908_p3 = scmp.ne.s32.totalorder %s1338_s9, %s907_s30  ;;  %p912_p12 = scmp.lt.s32.totalorder %s1338_s9, %s1408_s4 }
 0x1ba   : > { %p913_p13 = scmp.lt.s32.totalorder %s911_s8, %s907_s30 }
 0x1bb   : > { %p909_p7 = pnand %p908_p3, %p1448_p10 }
 0x1bc   : > { %p914_p9 = por %p913_p13, %p912_p12 }
 0x1bd   : > { %p910_p0 = pneg %p909_p7 }
 0x1bf   : > { %p915_p1 = pnand %p914_p9, %p910_p0 }
 0x1c1   : > { %918 = shalt.err (!%p915_p1)
}
 0x1c2   : > { %s1025_s23 = smov 128   ;;  %s1026_s7 = smov 256  }
 0x1c3   : > { %s1027_s1 = smov 8  }
 0x1c4   : > { %689 = dma.vmem_to_hbm [thread:$0]  (%p1448_p10), %s1341_s14, 256, %s1338_s9, %s1345_s10, %s1025_s23, %s1026_s7, %s1027_s1  }
 0x1c5 PF: > { %s1449_s28 = sld [smem:[#allocation18_spill]]  ;;  %s514_s6 = sand.u32 1, %s977_s15  }
 0x1c6   : > { %p1451_p11 = scmp.ge.s32.totalorder %s1013_s24, 2  ;;  %s515_s17 = scalar_lea.sflag [#allocation4], %s514_s6 }
 0x1cb   : > { %p1450_p8 = scmp.ne.s32.totalorder %s1449_s28, 0 }
 0x1cd   : > { %p703_p2 = pnand %p1451_p11, %p1450_p8 }
 0x1cf   : > { %p704_p5 = pneg %p703_p2 }
 0x1d1   : > { %972 = dma.done.wait (%p704_p5), %s515_s17, 256  }
 0x1d2   : > { %974 = vsyncadd (%p704_p5), %s515_s17, 4294967040  ;;  %s1452_s24 = sld [smem:[#allocation15_spill]]  ;;  %s1457_s15 = smov %s981_s16 }
 0x1d3   : > { %s1453_s13 = sld [smem:[#allocation13_spill]]  ;;  %s1459_s18 = smov %s993_s19 }
 0x1d4   : > { %s1454_s17 = sld [smem:[#allocation17_spill]]  ;;  %s1460_s19 = smov %s997_s20 }
 0x1d5   : > { %s1455_s9 = sld [smem:[#allocation14_spill]]  ;;  %s1461_s20 = smov %s1246_s25 }
 0x1d6   : > { %s1456_s23 = sld [smem:[#allocation16_spill]]  ;;  %s1462_s21 = smov %s1005_s22 }
 0x1d8   : > { %p18_p10 = scmp.ge.s32.totalorder %s1452_s24, 4  }
 0x1d9   : > { %s1458_s16 = smov %s1453_s13 }
 0x1da   :  { %20 = sbr.rel (!%p18_p10) target bundleno = 11 (0xb), region = 108 }
 0x1db   : > { %s1463_s22 = smov %s1455_s9 }
 0x1df   :  { %520 = vsyncpa [#allocation3], 1 }
 0x1e0   :  { %522 = vsyncpa [#allocation3 + $0x1], 1 }
 0x1e1   :  { %523 = vsyncpa [#allocation6], 1 }
 0x1e2   :  { %525 = vsyncpa [#allocation6 + $0x1], 1 }
 0x1e3   :  { %526 = vsyncpa [#allocation4], 1 }
 0x1e4   :  { %528 = vsyncpa [#allocation4 + $0x1], 1 }

</bundles_post_ra>
